<compile_context>
chip_gen: v7x
topology: tpu7x:2x2x1
jax: 0.10.0
libtpu: 0.0.40
codegen_flags: <defaults>
</compile_context>

<pallas_src>
import jax
import jax.numpy as jnp
from jax.experimental import pallas as pl
from jax.experimental.pallas import tpu as pltpu

HIDDEN = 768


def pool_classify_kernel(h_ref, w_ref, b_ref, o_ref, acc_ref):
    """Grid = (B//TB, S//TS); batch is 'parallel', sequence is the reduction.

    h_ref:   (TB, TS, H) bf16 hidden-state tile (double-buffered by BlockSpec)
    w_ref:   (H, Cp)     f32 classifier weight * (1/S), lane-padded, resident
    b_ref:   (1, Cp)     f32 classifier bias,           lane-padded, resident
    o_ref:   (TB, Cp)    f32 padded logits (written once per batch tile)
    acc_ref: (TB, 1, H)  f32 running sequence-sum (VMEM scratch)
    """
    s = pl.program_id(1)

    @pl.when(s == 0)
    def _init():
        acc_ref[...] = jnp.zeros_like(acc_ref)

    # Sequence-sum on the MXU: contract the bf16 tile against a bf16 ones row
    # over the TS axis (f32 accumulation).  The MXU is otherwise idle until the
    # finalize step, so this keeps the VALU free and the loop HBM-bound.
    h = h_ref[...]
    tb, ts, hdim = h.shape
    ones_row = jnp.ones((tb, 1, ts), dtype=h.dtype)
    acc_ref[...] += jnp.einsum('bot,bth->boh', ones_row, h,
                               preferred_element_type=jnp.float32)

    @pl.when(s == pl.num_programs(1) - 1)
    def _finalize():
        # 1/S is already folded into w_ref; Dropout(0.1) is identity in eval.
        pooled = acc_ref[...].reshape(tb, hdim)          # f32 sequence-sum
        logits = jnp.dot(pooled, w_ref[...],
                         preferred_element_type=jnp.float32)  # MXU, once / tile
        o_ref[...] = logits + b_ref[...]                 # broadcast bias


def _vmem_capacity_bytes():
    try:
        return int(pltpu.get_tpu_info().vmem_capacity_bytes)
    except Exception:
        return 64 << 20  # conservative fallback = v7x (smallest physical VMEM)


def _pick_tb(batch):
    # Prefer a batch grid of length >= 2 so the 'parallel' axis can shard
    # across both TensorCores on v7x; keep blocks sublane-friendly (mult of 8).
    for cand in (16, 8):
        if batch % cand == 0 and batch // cand >= 2:
            return cand
    if batch % 8 == 0:
        return 8
    return batch  # small batches: full-array block (allowed by Pallas)


def _pick_ts(seq, tb, itemsize, budget_bytes):
    # No tiles below 16 rows (bf16 sublane packing); prefer 256-512.
    cands = [c for c in (512, 256, 128, 64, 32, 16) if seq % c == 0]
    for c in cands:
        if 2 * tb * c * HIDDEN * itemsize <= budget_bytes:
            return c
    return cands[-1] if cands else seq


def camembert_classifier_head(hidden_states, weight, bias, *, tb=None, ts=None):
    """hidden_states: (B, S, H) bf16/f32; weight: (H, C) f32; bias: (C,) f32."""
    B, S, H = hidden_states.shape
    assert H == HIDDEN
    C = weight.shape[1]
    h_itemsize = jnp.dtype(hidden_states.dtype).itemsize

    vmem_cap = _vmem_capacity_bytes()
    if tb is None:
        tb = _pick_tb(B)
    if ts is None:
        ts = _pick_ts(S, tb, h_itemsize, int(0.55 * vmem_cap))
    assert B % tb == 0 and S % ts == 0

    # Lane-dense classifier: pad C to (a multiple of) 128 lanes, zeros sliced
    # off in the wrapper; fold the 1/S of the mean into the weights.
    cp = max(128, pl.cdiv(C, 128) * 128)
    w_pad = jnp.zeros((H, cp), jnp.float32).at[:, :C].set(
        weight.astype(jnp.float32) * (1.0 / S))
    b_pad = jnp.zeros((1, cp), jnp.float32).at[:, :C].set(
        bias.astype(jnp.float32).reshape(1, C))

    # Explicit VMEM budget (never rely on the 16 MiB v5e / 32 MiB v6e-v7x
    # default scoped limit): double-buffered hidden tile + resident weight/bias
    # + output block + f32 accumulator, plus margin, clamped under physical.
    hidden_bytes = 2 * tb * ts * H * h_itemsize
    fixed_bytes = (2 * (H * cp + cp) * 4      # weight + bias (double-buffered)
                   + 2 * tb * cp * 4          # output block
                   + tb * 8 * H * 4)          # (tb,1,H) f32 acc, sublane-padded
    vmem_limit = int(min(0.9 * vmem_cap,
                         max(hidden_bytes + fixed_bytes + (4 << 20), 32 << 20)))

    grid = (B // tb, S // ts)
    cost = pl.CostEstimate(
        flops=2 * B * S * H + 2 * B * H * cp,
        transcendentals=0,
        bytes_accessed=B * S * H * h_itemsize + (H * cp + cp + B * cp) * 4)

    logits_pad = pl.pallas_call(
        pool_classify_kernel,
        out_shape=jax.ShapeDtypeStruct((B, cp), jnp.float32),
        grid_spec=pltpu.PrefetchScalarGridSpec(
            num_scalar_prefetch=0,
            grid=grid,
            in_specs=[
                # Hidden tiles: the only large input, pipelined by BlockSpec.
                pl.BlockSpec((tb, ts, H), lambda b, s: (b, s, 0)),
                # Resident classifier weight/bias: constant index_map, so the
                # block never changes and is DMA'd once, not per sequence step.
                pl.BlockSpec((H, cp), lambda b, s: (0, 0)),
                pl.BlockSpec((1, cp), lambda b, s: (0, 0)),
            ],
            out_specs=pl.BlockSpec((tb, cp), lambda b, s: (b, 0)),
            scratch_shapes=[pltpu.VMEM((tb, 1, H), jnp.float32)],
        ),
        compiler_params=pltpu.CompilerParams(
            dimension_semantics=("parallel", "arbitrary"),
            vmem_limit_bytes=vmem_limit),
        cost_estimate=cost,
    )(hidden_states, w_pad, b_pad)

    return logits_pad[:, :C]


def synthetic_camembert_last_hidden_state(input_ids, attention_mask, emb_table):
    """Deterministic stand-in for the CamemBERT backbone (plain-JAX glue).

    attention_mask is accepted for signature parity; the PyTorch forward passes
    it to the backbone but does NOT use it in the pooling.
    """
    # TODO(synk): full 12-layer transformer encoder not translated to Pallas.
    del attention_mask
    return emb_table[input_ids]  # (B, S, H) in emb_table dtype


if __name__ == "__main__":
    key = jax.random.PRNGKey(0)
    k_emb, k_w, k_b, k_ids = jax.random.split(key, 4)

    # Small shapes consistent with the module: batch=2, seq=32, hidden=768.
    B, S, H = 2, 32, HIDDEN
    num_classes = 4
    vocab = 64

    # bf16 hidden states halve HBM traffic for the only large tensor.
    emb_table = (jax.random.normal(k_emb, (vocab, H), jnp.float32) * 0.02
                 ).astype(jnp.bfloat16)
    clf_weight = jax.random.normal(k_w, (H, num_classes), jnp.float32) * 0.02
    clf_bias = jax.random.normal(k_b, (num_classes,), jnp.float32) * 0.02

    input_ids = jax.random.randint(k_ids, (B, S), 0, vocab, dtype=jnp.int32)
    attention_mask = jnp.ones((B, S), dtype=jnp.int32)

    # "camembert(...)" stand-in + Pallas head.  ts=16 (bf16-sublane friendly
    # minimum) forces a 2-step sequence reduction to exercise init/finalize.
    hidden_states = synthetic_camembert_last_hidden_state(
        input_ids, attention_mask, emb_table)
    logits = camembert_classifier_head(hidden_states, clf_weight, clf_bias,
                                       tb=B, ts=16)
    logits = jax.block_until_ready(logits)

    # Plain-JAX reference (same eval-mode semantics as the PyTorch forward).
    pooled_ref = hidden_states.astype(jnp.float32).sum(axis=1) / S
    ref = pooled_ref @ clf_weight + clf_bias
    assert logits.shape == (B, num_classes)
    assert jnp.allclose(logits, ref, atol=1e-3, rtol=1e-3)

    print("KERNEL_OK")
</pallas_src>

<mosaic_0001>
module attributes {stable_mosaic.version = 11 : i64} {
  func.func @pool_classify_kernel(%arg0: i32, %arg1: i32, %arg2: memref<2x16x768xbf16, #tpu.memory_space<vmem>>, %arg3: memref<768x128xf32, #tpu.memory_space<vmem>>, %arg4: memref<1x128xf32, #tpu.memory_space<vmem>>, %arg5: memref<2x128xf32, #tpu.memory_space<vmem>>, %arg6: memref<2x1x768xf32, #tpu.memory_space<vmem>>) attributes {dimension_semantics = [#tpu.dimension_semantics<parallel>, #tpu.dimension_semantics<arbitrary>], iteration_bounds = array<i64: 1, 2>, scalar_prefetch = 0 : i64, scratch_operands = 1 : i64, tpu.core_type = #tpu.core_type<tc>, window_params = [{transform_indices = @transform_0, window_bounds = array<i64: 2, 16, 768>}, {pipeline_mode = #tpu.pipeline_mode<synchronous>, transform_indices = @transform_1, window_bounds = array<i64: 768, 128>}, {pipeline_mode = #tpu.pipeline_mode<synchronous>, transform_indices = @transform_2, window_bounds = array<i64: 1, 128>}, {transform_indices = @transform_3, window_bounds = array<i64: 2, 128>}]} {
    %c0_i32 = arith.constant 0 : i32
    %0 = arith.cmpi eq, %arg1, %c0_i32 : i32
    %1 = arith.extui %0 : i1 to i32
    %c0_i32_0 = arith.constant 0 : i32
    %2 = arith.cmpi ne, %1, %c0_i32_0 : i32
    scf.if %2 {
      %cst_11 = arith.constant 0.000000e+00 : f32
      %12 = vector.broadcast %cst_11 : f32 to vector<2x1x768xf32>
      %c0_12 = arith.constant 0 : index
      %c0_13 = arith.constant 0 : index
      %c0_14 = arith.constant 0 : index
      %13 = vector.load %arg6[%c0_12, %c0_13, %c0_14] : memref<2x1x768xf32, #tpu.memory_space<vmem>>, vector<2x1x768xf32>
      tpu.vector_store %arg6[%c0_12, %c0_13, %c0_14], %12 {strides = array<i32>} : memref<2x1x768xf32, #tpu.memory_space<vmem>>, vector<2x1x768xf32>,
    } else {
    }
    %c0 = arith.constant 0 : index
    %c0_1 = arith.constant 0 : index
    %c0_2 = arith.constant 0 : index
    %3 = vector.load %arg2[%c0, %c0_1, %c0_2] : memref<2x16x768xbf16, #tpu.memory_space<vmem>>, vector<2x16x768xbf16>
    %cst = arith.constant 1.000000e+00 : bf16
    %4 = vector.broadcast %cst : bf16 to vector<2x1x16xbf16>
    %c0_3 = arith.constant 0 : index
    %c0_4 = arith.constant 0 : index
    %c0_5 = arith.constant 0 : index
    %5 = vector.load %arg6[%c0_3, %c0_4, %c0_5] : memref<2x1x768xf32, #tpu.memory_space<vmem>>, vector<2x1x768xf32>
    "tpu.trace_start"() <{level = 10 : i32, message = "bot,bth->boh"}> : () -> ()
    %cst_6 = arith.constant dense<0.000000e+00> : vector<2x1x768xf32>
    %6 = tpu.matmul %4, %3, %cst_6 {dimension_numbers = #tpu.dot_dimension_numbers<[2], [1], [1], [2], [0, 0, 0, 1, 1, 2], [0], [0]>} : vector<2x1x16xbf16>, vector<2x16x768xbf16>, vector<2x1x768xf32> -> vector<2x1x768xf32>
    "tpu.trace_stop"() : () -> ()
    %7 = arith.addf %5, %6 : vector<2x1x768xf32>
    %c0_7 = arith.constant 0 : index
    %c0_8 = arith.constant 0 : index
    %c0_9 = arith.constant 0 : index
    %8 = vector.load %arg6[%c0_7, %c0_8, %c0_9] : memref<2x1x768xf32, #tpu.memory_space<vmem>>, vector<2x1x768xf32>
    tpu.vector_store %arg6[%c0_7, %c0_8, %c0_9], %7 {strides = array<i32>} : memref<2x1x768xf32, #tpu.memory_space<vmem>>, vector<2x1x768xf32>,
    %c1_i32 = arith.constant 1 : i32
    %9 = arith.cmpi eq, %arg1, %c1_i32 : i32
    %10 = arith.extui %9 : i1 to i32
    %c0_i32_10 = arith.constant 0 : i32
    %11 = arith.cmpi ne, %10, %c0_i32_10 : i32
    scf.if %11 {
      %c0_11 = arith.constant 0 : index
      %c0_12 = arith.constant 0 : index
      %c0_13 = arith.constant 0 : index
      %12 = vector.load %arg6[%c0_11, %c0_12, %c0_13] : memref<2x1x768xf32, #tpu.memory_space<vmem>>, vector<2x1x768xf32>
      %13 = vector.shape_cast %12 : vector<2x1x768xf32> to vector<2x768xf32>
      %c0_14 = arith.constant 0 : index
      %c0_15 = arith.constant 0 : index
      %14 = vector.load %arg3[%c0_14, %c0_15] : memref<768x128xf32, #tpu.memory_space<vmem>>, vector<768x128xf32>
      %cst_16 = arith.constant dense<0.000000e+00> : vector<2x128xf32>
      %15 = tpu.matmul %13, %14, %cst_16 {dimension_numbers = #tpu.dot_dimension_numbers<[1], [0], [0], [1], [0, 0, 1, 1], [], []>} : vector<2x768xf32>, vector<768x128xf32>, vector<2x128xf32> -> vector<2x128xf32>
      %c0_17 = arith.constant 0 : index
      %c0_18 = arith.constant 0 : index
      %16 = vector.load %arg4[%c0_17, %c0_18] : memref<1x128xf32, #tpu.memory_space<vmem>>, vector<1x128xf32>
      %17 = vector.broadcast %16 : vector<1x128xf32> to vector<2x128xf32>
      %18 = arith.addf %15, %17 : vector<2x128xf32>
      %c0_19 = arith.constant 0 : index
      %c0_20 = arith.constant 0 : index
      %19 = vector.load %arg5[%c0_19, %c0_20] : memref<2x128xf32, #tpu.memory_space<vmem>>, vector<2x128xf32>
      tpu.vector_store %arg5[%c0_19, %c0_20], %18 {strides = array<i32>} : memref<2x128xf32, #tpu.memory_space<vmem>>, vector<2x128xf32>,
    } else {
    }
    return
  }
  func.func @transform_0(%arg0: i32, %arg1: i32) -> (i32, i32, i32) {
    %c0_i32 = arith.constant 0 : i32
    %c0_i32_0 = arith.constant 0 : i32
    return %arg0, %arg1, %c0_i32 : i32, i32, i32
  }
  func.func @transform_1(%arg0: i32, %arg1: i32) -> (i32, i32) {
    %c0_i32 = arith.constant 0 : i32
    %c0_i32_0 = arith.constant 0 : i32
    %c0_i32_1 = arith.constant 0 : i32
    return %c0_i32, %c0_i32_0 : i32, i32
  }
  func.func @transform_2(%arg0: i32, %arg1: i32) -> (i32, i32) {
    %c0_i32 = arith.constant 0 : i32
    %c0_i32_0 = arith.constant 0 : i32
    %c0_i32_1 = arith.constant 0 : i32
    return %c0_i32, %c0_i32_0 : i32, i32
  }
  func.func @transform_3(%arg0: i32, %arg1: i32) -> (i32, i32) {
    %c0_i32 = arith.constant 0 : i32
    %c0_i32_0 = arith.constant 0 : i32
    return %arg0, %c0_i32 : i32, i32
  }
}

</mosaic_0001>

<bundles_post_ra>
// kernel: tpu_custom_call.1
= control target key start
LH: loop header
LB: loop body
LE: loop exit
PB: predicated region body
PF: predicated region fallthrough
CT: control target
= control target key end

     0   :  { %8 = vsyncpa [#allocation4], 0  ;;  %s1858_s0 = inlined_call_operand.hbm [shape: bf16[2,32,768], index: 0, kind: input, shape index: {}]   ;;  %s1859_s1 = inlined_call_operand.hbm [shape: f32[768,128], index: 1, kind: input, shape index: {}]   ;;  %s1860_s2 = inlined_call_operand.vmem [shape: f32[1,128], index: 2, kind: input, shape index: {}]   ;;  %s1861_s3 = inlined_call_operand.hbm [shape: f32[2,128], index: 3, kind: output, shape index: {}]  }
   0x1   :  { %10 = vsyncpa [#allocation4 + $0x1], 0 }
   0x2   :  { %11 = vsyncpa [#allocation7], 0 }
   0x3   :  { %12 = vsyncpa [#allocation5], 0  ;;  %s1635_s12 = smov 0   ;;  %s1637_s13 = smov 0  }
   0x4   :  { %s1639_s14 = smov 0   ;;  %s1641_s15 = smov 0  }
   0x5   :  { %s1643_s16 = smov 0   ;;  %s1645_s17 = smov 0  }
   0x6 LB: > { %s1139_s18 = sadd.s32 4294967295, %s1599_s17   ;;  %s27_s19 = sadd.s32 1, %s1595_s16  ;;  %s1599_s17 = sphi %s1645_s17, %s18_s17   ;;  %s1595_s16 = sphi %s1643_s16, %s1883_s16   ;;  %s1591_s15 = sphi %s1641_s15, %s1882_s15   ;;  %s1587_s14 = sphi %s1639_s14, %s1881_s14   ;;  %s1583_s13 = sphi %s1637_s13, %s1880_s13   ;;  %s1579_s12 = sphi %s1635_s12, %s1879_s12  }
   0x7   : > { %p28_p0 = scmp.ge.s32.totalorder %s27_s19, 2  ;;  %s39_s20 = sadd.s32 1, %s1587_s14 }
   0x8   : > { %p46_p1 = scmp.ne.s32.totalorder %s1587_s14, %s1583_s13  ;;  %p47_p2 = scmp.eq.s32.totalorder %s1599_s17, 0 }
   0x9   : > { %s1885_s19 = smov (%p28_p0, %s27_s19), 0  ;;  %p52_p4 = scmp.ne.s32.totalorder %s1583_s13, %s1579_s12 }
   0xa   : > { %p1671_p3 = por %p47_p2, %p46_p1  ;;  %s35_s22 = ssub.s32 %s1595_s16, %s1885_s19 }
   0xb   : > { %p1680_p5 = scmp.eq.s32.totalorder %s1139_s18, 0  ;;  %p37_p6 = scmp.eq.s32.totalorder %s35_s22, 0 }
   0xc   : > { %s1867_s21 = scalar_select %p1671_p3, 1, 0 }
   0xd   : > { %s1868_s23 = scalar_select %p1680_p5, 1, 0 }
   0xe   : > { %p1140_p7 = scmp.ge.s32.totalorder %s1599_s17, 1  ;;  %p1687_p8 = por %p1680_p5, %p52_p4 }
   0xf   : > { %p131_p9 = scmp.lt.s32.totalorder %s1599_s17, 3  ;;  %s1601_s27 = smov [#allocation6]  }
  0x10   : > { %s1869_s24 = scalar_select %p1687_p8, 1, 0 }
  0x11   : > { %s1693_s25 = scalar_select %p37_p6, %s1587_s14, %s39_s20  }
  0x12   : > { %p1695_p10 = pnand %p1140_p7, %p131_p9  ;;  %s143_s28 = sshll.u32 %s1601_s27, 4  ;;  %s144_s28 = int_to_ptr.vmem [resolvable:$true] %s143_s28 }
  0x13   : > { %s1487_s5 = scalar_lea.hbm %s1859_s1, 12288 }
  0x14   : > { %s1870_s26 = scalar_select %p1695_p10, 1, 0 }
  0x15   : > { %p1396_p11 = pneg %p1695_p10  ;;  %p1488_p13 = scmp.ne.s32.totalorder %s1859_s1, %s1487_s5 }
  0x16   : > { %p1494_p4 = scmp.lt.u32.totalorder %s1487_s5, %s1859_s1 }
  0x17   : > { %p1703_p12 = pnand %p1396_p11, %p1680_p5 }
  0x19   : > { %p1489_p0 = pneg %p1703_p12 }
  0x1b   : > { %p1490_p1 = pnand %p1489_p0, %p1488_p13 }
  0x1d   : > { %p1491_p2 = pneg %p1490_p1 }
  0x1f   : > { %p1496_p6 = pnand %p1494_p4, %p1491_p2 }
  0x21   : > { %1499 = shalt.err (!%p1496_p6)
}
  0x22   : > { %s1500_s10 = scalar_lea.vmem %s144_s28, 12288  ;;  %p1508_p5 = scmp.lt.s32.totalorder %s144_s28, %s144_s28 }
  0x23   : > { %p1501_p7 = scmp.ne.s32.totalorder %s144_s28, %s1500_s10  ;;  %p1509_p8 = scmp.lt.s32.totalorder %s1500_s10, %s1500_s10 }
  0x25   : > { %p1503_p9 = pnand %p1501_p7, %p1489_p0  ;;  %p1510_p10 = por %p1509_p8, %p1508_p5 }
  0x27   : > { %p1504_p11 = pneg %p1503_p9 }
  0x29   : > { %p1511_p3 = pnand %p1510_p10, %p1504_p11 }
  0x2b   : > { %1514 = shalt.err (!%p1511_p3)
}
  0x2c   : > { %s1602_s11 = smov 128   ;;  %s1603_s12 = smov 8  }
  0x2d   : > { %1399 = dma.hbm_to_vmem [thread:$0]  (!%p1703_p12), %s1859_s1, 12288, %s144_s28, [#allocation7], %s1602_s11, %s1602_s11, %s1603_s12  }
  0x2e   : > { %p1142_p13 = scmp.ge.s32.totalorder %s1599_s17, 2 }
  0x30   : > { %156 = sbr.rel (%p1142_p13) target bundleno = 71 (0x47), region = 24 }
  0x37   : > { %s160_s27 = sand.u32 1, %s1587_s14   ;;  %s1377_s30 = smul.u32 768, %s1595_s16 }
  0x38   : > { %s1376_s4 = smul.u32 96, %s160_s27  ;;  %s1604_s5 = smov 1536  }
  0x39   : > { %p1872_p3 = scmp.ne.s32.totalorder %s1867_s21, 0  ;;  %s174_s7 = scalar_lea.hbm %s1858_s0, %s1377_s30 }
  0x3a   : > { %s164_s9 = scalar_lea.vmem [#allocation3], %s1376_s4  ;;  %s1605_s11 = smov 768  }
  0x3b   : > { %1382 = sst [smem:[#allocation10]] (%p1872_p3), %s1604_s5  ;;  %s187_s10 = sshll.u32 %s164_s9, 4  ;;  %s188_s10 = int_to_ptr.vmem [resolvable:$true] %s187_s10 }
  0x3c   : > { %s1381_s28 = scalar_select %p1872_p3, [#allocation0], [#allocation11] }
  0x3d   : > { %1383 = sst [smem:[#allocation10 + $0x1]] (%p1872_p3), %s1605_s11  ;;  %s1606_s12 = smov 2  }
  0x3e   : > { %s179_s8 = sld [smem:[%s1381_s28]]   ;;  %s1607_s20 = smov 384  }
  0x3f   : > { %1384 = sst [smem:[#allocation10 + $0x2]] (%p1872_p3), %s1606_s12  ;;  %s1608_s22 = smov 24  }
  0x40   : > { %1385 = sst [smem:[#allocation10 + $0x3]] (%p1872_p3), %s1607_s20  ;;  %s161_s4 = scalar_lea.sflag [#allocation4], %s160_s27 }
  0x41   : > { %1386 = sst [smem:[#allocation10 + $0x4]] (%p1872_p3), %s1607_s20  ;;  %s1609_s28 = smov [#allocation9]  }
  0x42   : > { %1387 = sst [smem:[#allocation10 + $0x5]] (%p1872_p3), %s1608_s22 }
  0x44   : > { %s1146_s30 = sshll.u32 %s179_s8, 26 }
  0x45   : > { %s1147_s5 = sadd.s32 134217728, %s1146_s30 }
  0x46   : > { %1388 = dma.general (%p1872_p3), %s174_s7, 1536, %s188_s10, %s161_s4, %s1609_s28, [#allocation10], %s1147_s5, 0  }
  0x47 PF: > { %p1873_p5 = scmp.ne.s32.totalorder %s1870_s26, 0 }
  0x48   : > { %s214_s29 = sand.u32 (!%p1873_p5), 1, %s1583_s13   ;;  %p1874_p8 = scmp.ne.s32.totalorder (!%p1873_p5), %s1869_s24, 0 }
  0x49   : > { %212 = sbr.rel (%p1873_p5) target bundleno = 632 (0x278), region = 32  ;;  %s215_s9 = scalar_lea.sflag (!%p1873_p5), [#allocation4], %s214_s29 }
  0x4a   : > { %s1378_s6 = smul.u32 (!%p1873_p5), 96, %s214_s29 }
  0x4c   : > { %s1748_s11 = scalar_lea.vmem (!%p1873_p5), [#allocation3], %s1378_s6 }
  0x50   : > { %1566 = dma.done.wait (%p1874_p8), %s215_s9, 1536  }
  0x51   : > { %1568 = vsyncadd (%p1874_p8), %s215_s9, 4294965760  ;;  %p1875_p10 = scmp.ne.s32.totalorder %s1868_s23, 0 }
  0x53   : > { %1570 = dma.done.wait (%p1875_p10), [#allocation7], 12288  }
  0x54   : > { %1572 = vsyncadd (%p1875_p10), [#allocation7], 4294955008  ;;  %p1150_p12 = scmp.ne.s32.totalorder %s1591_s15, 0 }
  0x55   : > { %v248_v0 = vlaneseq (!%p1150_p12)  ;;  %v1610_v1 = vmov (!%p1150_p12), 0.0  }
  0x56   : > { %247 = sbr.rel (%p1150_p12) target bundleno = 93 (0x5d), region = 44 }
  0x57   : > { %vm250_vm0 = vcmp.lt.s32.totalorder (!%p1150_p12), %v248_v0, 768 }
  0x58   : > { %252 = vst.msk [vmem:[#allocation2] sm:$0x3f] (!%p1150_p12), %vm250_vm0, %v1610_v1  ;;  %253 = vst.msk [vmem:[#allocation2 + $0x6] sm:$0x3f] (!%p1150_p12), %vm250_vm0, %v1610_v1 }
  0x5d PF: > { %v1466_v2 = vld [vmem:[%s1748_s11 + $0x4] ss:$24 sps:$4 sm:$0xff]   ;;  %v1611_v4 = vmov 0   ;;  %v1470_v5 = vld [vmem:[%s1748_s11] ss:$24 sps:$4 sm:$0xff]   ;;  %vm298_vm1 = vcmask 130048   ;;  %v596_v18 = vlaneseq }
  0x5e   : > { %v1468_v3 = vld [vmem:[%s1748_s11 + $0xc] ss:$24 sps:$4 sm:$0xff]   ;;  %334 = vmatprep.mubr.bf16.mxu0 %v1611_v4  ;;  %375 = vmatprep.mubr.bf16.mxu1 %v1611_v4  ;;  %v1471_v6 = vld [vmem:[%s1748_s11 + $0x8] ss:$24 sps:$4 sm:$0xff]   ;;  %v1480_v11 = vld [vmem:[%s1748_s11 + $0x3c] ss:$24 sps:$4 sm:$0xff]  }
  0x5f   : > { %302 = vmatprep.subr.bf16.mxu0 %v1466_v2  ;;  %343 = vmatprep.subr.bf16.mxu1 %v1468_v3  ;;  %v1472_v7 = vld [vmem:[%s1748_s11 + $0x10] ss:$24 sps:$4 sm:$0xff]   ;;  %v1474_v8 = vld [vmem:[%s1748_s11 + $0x14] ss:$24 sps:$4 sm:$0xff]   ;;  %v1612_v12 = vmov 1065369472  }
  0x60   : > { %303 = vmatpush1.bf16.msra.mxu0 %v1470_v5  ;;  %344 = vmatpush1.bf16.msra.mxu1 %v1471_v6  ;;  %v1475_v9 = vld [vmem:[%s1748_s11 + $0x30] ss:$24 sps:$4 sm:$0xff]   ;;  %v1477_v10 = vld [vmem:[%s1748_s11 + $0x34] ss:$24 sps:$4 sm:$0xff]   ;;  %v1483_v13 = vld [vmem:[%s1748_s11 + $0x44] ss:$24 sps:$4 sm:$0xff]  }
  0x61   : > { %384 = vmatprep.subr.bf16.mxu0 %v1474_v8  ;;  %455 = vmatprep.subr.bf16.mxu1 %v1477_v10  ;;  %v1478_v14 = vld [vmem:[%s1748_s11 + $0x38] ss:$24 sps:$4 sm:$0xff]   ;;  %v1613_v16 = vmov 1966171168   ;;  %v597_v20 = vshrl.u32 %v596_v18, 7  ;;  %vm1784_vm2 = vcmp.lt.s32.totalorder %v596_v18, 768 }
  0x62   : > { %v1481_v15 = vld [vmem:[%s1748_s11 + $0x40] ss:$24 sps:$4 sm:$0xff]   ;;  %v594_v17 = vunpack.c.l.s4 %v1613_v16  ;;  %p1169_p0 = scmp.ne.s32.totalorder %s1591_s15, 1 }
  0x63   : > { %1157 = vmatmul.mubr.msk.bf16.vlgmr.msra.gmra.mrb[0].mxu0 %vm298_vm1, %v1612_v12  ;;  %1158 = vmatmul.mubr.msk.bf16.vlgmr.msra.gmra.mrb[0].mxu1 %vm298_vm1, %v1612_v12  ;;  %v266_v48 = vld [vmem:[#allocation2] sm:$0x3f]  ;;  %v703_v8 = vld [vmem:[#allocation6 + $0x88] sm:$0xff] (!%p1169_p0)  ;;  %v718_v16 = vld [vmem:[#allocation6 + $0x100] sm:$0xff] (!%p1169_p0) }
  0x64   : > { %385 = vmatpush1.bf16.msra.mxu0 %v1472_v7  ;;  %456 = vmatpush1.bf16.msra.mxu1 %v1475_v9  ;;  %v595_v19 = vunpack.c.0.s8 %v594_v17  ;;  %v702_v7 = vld [vmem:[#allocation6 + $0x80] sm:$0xff] (!%p1169_p0)  ;;  %v719_v17 = vld [vmem:[#allocation6 + $0x108] sm:$0xff] (!%p1169_p0)  ;;  %v704_v18 = vld [vmem:[#allocation6 + $0x90] sm:$0xff] (!%p1169_p0) }
  0x65   : > { %416 = vmatprep.mubr.bf16.mxu0 %v1611_v4  ;;  %487 = vmatprep.mubr.bf16.mxu1 %v1611_v4  ;;  %v686_v9 = vld [vmem:[#allocation6] sm:$0xff] (!%p1169_p0)  ;;  %v1280_v10 = vpack.c.bf16 (!%p1169_p0), %v703_v8, %v702_v7  ;;  %v724_v52 = vld [vmem:[#allocation6 + $0x130] sm:$0xff] (!%p1169_p0) }
  0x66   : > { %496 = vmatprep.subr.bf16.mxu0 %v1480_v11  ;;  %537 = vmatprep.subr.bf16.mxu1 %v1483_v13  ;;  %v1777_v23 = vsub.s32 %v595_v19, %v597_v20  ;;  %v687_v11 = vld [vmem:[#allocation6 + $0x8] sm:$0xff] (!%p1169_p0)  ;;  %v1314_v19 = vpack.c.bf16 (!%p1169_p0), %v719_v17, %v718_v16  ;;  %v705_v20 = vld [vmem:[#allocation6 + $0x98] sm:$0xff] (!%p1169_p0)  ;;  %v698_v16 = vld [vmem:[#allocation6 + $0x60] sm:$0xff] (!%p1169_p0) }
  0x67   : > { %v735_v13 = vld [vmem:[#allocation6 + $0x188] sm:$0xff] (!%p1169_p0)  ;;  %v746_v17 = vld [vmem:[#allocation6 + $0x1e0] sm:$0xff] (!%p1169_p0) }
  0x6b   : > { %1159 = vmatmul.mubr.msk.bf16.vlgmr.msra.gmra.mrb[4].mxu0 %vm298_vm1, %v1612_v12  ;;  %1166 = vmatmul.mubr.msk.bf16.vlgmr.msra.gmra.mrb[4].mxu1 %vm298_vm1, %v1612_v12 }
  0x6c   : > { %497 = vmatpush1.bf16.msra.mxu0 %v1478_v14  ;;  %538 = vmatpush1.bf16.msra.mxu1 %v1481_v15  ;;  %v1282_v14 = vpack.c.bf16 (!%p1169_p0), %v687_v11, %v686_v9  ;;  %v696_v9 = vld [vmem:[#allocation6 + $0x50] sm:$0xff] (!%p1169_p0) }
  0x6d   : > { %528 = vmatprep.mubr.bf16.mxu0 %v1611_v4  ;;  %569 = vmatprep.mubr.bf16.mxu1 %v1611_v4  ;;  %v267_v4 = vld [vmem:[#allocation2 + $0x6] sm:$0x3f]  ;;  %v728_v11 = vld [vmem:[#allocation6 + $0x150] sm:$0xff] (!%p1169_p0) }
  0x6e   : > { %1281 = vmatprep.subr.bf16.mxu0 (!%p1169_p0), %v1280_v10  ;;  %v697_v10 = vld [vmem:[#allocation6 + $0x58] sm:$0xff] (!%p1169_p0) }
  0x73   : > { %1167 = vmatmul.mubr.msk.bf16.vlgmr.msra.gmra.mrb[8].mxu0 %vm298_vm1, %v1612_v12  ;;  %1168 = vmatmul.mubr.msk.bf16.vlgmr.msra.gmra.mrb[8].mxu1 %vm298_vm1, %v1612_v12  ;;  %v734_v12 = vld [vmem:[#allocation6 + $0x180] sm:$0xff] (!%p1169_p0) }
  0x74   : > { %v1312_v15 = vpack.c.bf16 (!%p1169_p0), %v735_v13, %v734_v12  ;;  %1283 = vmatpush3.bf16.msra.mxu0 (!%p1169_p0), %v1282_v14  ;;  %v729_v13 = vld [vmem:[#allocation6 + $0x158] sm:$0xff] (!%p1169_p0)  ;;  %v714_v14 = vld [vmem:[#allocation6 + $0xe0] sm:$0xff] (!%p1169_p0) }
  0x76   : > { %1313 = vmatprep.subr.bf16.mxu1 (!%p1169_p0), %v1312_v15  ;;  %v715_v15 = vld [vmem:[#allocation6 + $0xe8] sm:$0xff] (!%p1169_p0) }
  0x77   : > { %1315 = vmatpush3.bf16.msra.mxu1 (!%p1169_p0), %v1314_v19  ;;  %v1302_v19 = vpack.c.bf16 (!%p1169_p0), %v697_v10, %v696_v9  ;;  %v756_v9 = vld [vmem:[#allocation6 + $0x230] sm:$0xff] (!%p1169_p0)  ;;  %v757_v10 = vld [vmem:[#allocation6 + $0x238] sm:$0xff] (!%p1169_p0) }
 0x136   : > { %v336_v21 = vpop.f32.mrb[0].mxu0  ;;  %v377_v22 = vpop.f32.mrb[0].mxu1 }
 0x137   : > { %v338_v24 = vpop.f32.mrb[1].mxu0  ;;  %v379_v25 = vpop.f32.mrb[1].mxu1 }
 0x138   : > { %v590_v26 = vcombine.low %v336_v21, %v338_v24  ;;  %v591_v27 = vcombine.low %v377_v22, %v379_v25  ;;  %v340_v28 = vpop.f32.mrb[2].mxu0  ;;  %v381_v29 = vpop.f32.mrb[2].mxu1  ;;  %v688_v21 = vld [vmem:[#allocation6 + $0x10] sm:$0xff] (!%p1169_p0)  ;;  %v689_v22 = vld [vmem:[#allocation6 + $0x18] sm:$0xff] (!%p1169_p0)  ;;  %v1284_v24 = vpack.c.bf16 (!%p1169_p0), %v705_v20, %v704_v18  ;;  %v747_v18 = vld [vmem:[#allocation6 + $0x1e8] sm:$0xff] (!%p1169_p0) }
 0x139   : > { %v341_v30 = vpop.f32.mrb[3].mxu0  ;;  %v382_v31 = vpop.f32.mrb[3].mxu1  ;;  %v1286_v25 = vpack.c.bf16 (!%p1169_p0), %v689_v22, %v688_v21  ;;  %v720_v28 = vld [vmem:[#allocation6 + $0x110] sm:$0xff] (!%p1169_p0)  ;;  %v699_v20 = vld [vmem:[#allocation6 + $0x68] sm:$0xff] (!%p1169_p0)  ;;  %v730_v21 = vld [vmem:[#allocation6 + $0x160] sm:$0xff] (!%p1169_p0)  ;;  %v1334_v22 = vpack.c.bf16 (!%p1169_p0), %v729_v13, %v728_v11  ;;  %v1358_v13 = vpack.c.bf16 (!%p1169_p0), %v757_v10, %v756_v9 }
 0x13a   : > { %v599_v32 = vrot.slane %v590_v26, %v1777_v23  ;;  %v606_v33 = vrot.slane %v591_v27, %v1777_v23  ;;  %v736_v26 = vld [vmem:[#allocation6 + $0x190] sm:$0xff] (!%p1169_p0)  ;;  %v737_v27 = vld [vmem:[#allocation6 + $0x198] sm:$0xff] (!%p1169_p0)  ;;  %v706_v31 = vld [vmem:[#allocation6 + $0xa0] sm:$0xff] (!%p1169_p0)  ;;  %1285 = vmatprep.subr.bf16.mxu0 (!%p1169_p0), %v1284_v24  ;;  %v1304_v24 = vpack.c.bf16 (!%p1169_p0), %v715_v15, %v714_v14 }
 0x13b   : > { %v1316_v29 = vpack.c.bf16 (!%p1169_p0), %v737_v27, %v736_v26  ;;  %v721_v30 = vld [vmem:[#allocation6 + $0x118] sm:$0xff] (!%p1169_p0)  ;;  %1287 = vmatpush3.bf16.msra.mxu0 (!%p1169_p0), %v1286_v25  ;;  %v731_v25 = vld [vmem:[#allocation6 + $0x168] sm:$0xff] (!%p1169_p0)  ;;  %v1336_v27 = vpack.c.bf16 (!%p1169_p0), %v747_v18, %v746_v17  ;;  %v774_v11 = vld [vmem:[#allocation6 + $0x2c0] sm:$0xff] (!%p1169_p0) }
 0x13c   : > { %v614_v34 = vcombine.low %v599_v32, %v606_v33  ;;  %v707_v32 = vld [vmem:[#allocation6 + $0xa8] sm:$0xff] (!%p1169_p0)  ;;  %v1318_v33 = vpack.c.bf16 (!%p1169_p0), %v721_v30, %v720_v28  ;;  %v716_v28 = vld [vmem:[#allocation6 + $0xf0] sm:$0xff] (!%p1169_p0)  ;;  %v758_v15 = vld [vmem:[#allocation6 + $0x240] sm:$0xff] (!%p1169_p0) }
 0x13d   : > { %1317 = vmatprep.subr.bf16.mxu1 (!%p1169_p0), %v1316_v29  ;;  %v717_v29 = vld [vmem:[#allocation6 + $0xf8] sm:$0xff] (!%p1169_p0)  ;;  %v776_v17 = vld [vmem:[#allocation6 + $0x2d0] sm:$0xff] (!%p1169_p0) }
 0x13e   : > { %v418_v35 = vpop.f32.mrb[4].mxu0  ;;  %v489_v36 = vpop.f32.mrb[4].mxu1  ;;  %v621_v46 = vrot.slane %v614_v34, %v1777_v23  ;;  %v1288_v34 = vpack.c.bf16 (!%p1169_p0), %v707_v32, %v706_v31  ;;  %1319 = vmatpush3.bf16.msra.mxu1 (!%p1169_p0), %v1318_v33  ;;  %v748_v31 = vld [vmem:[#allocation6 + $0x1f0] sm:$0xff] (!%p1169_p0)  ;;  %v749_v32 = vld [vmem:[#allocation6 + $0x1f8] sm:$0xff] (!%p1169_p0) }
 0x13f   : > { %v420_v37 = vpop.f32.mrb[5].mxu0  ;;  %v491_v38 = vpop.f32.mrb[5].mxu1  ;;  %v777_v18 = vld [vmem:[#allocation6 + $0x2d8] sm:$0xff] (!%p1169_p0) }
 0x140   : > { %v592_v39 = vcombine.low %v418_v35, %v420_v37  ;;  %v630_v40 = vcombine.low %v489_v36, %v491_v38  ;;  %v422_v41 = vpop.f32.mrb[6].mxu0  ;;  %v493_v42 = vpop.f32.mrb[6].mxu1  ;;  %v690_v35 = vld [vmem:[#allocation6 + $0x20] sm:$0xff] (!%p1169_p0)  ;;  %v691_v36 = vld [vmem:[#allocation6 + $0x28] sm:$0xff] (!%p1169_p0)  ;;  %1289 = vmatprep.subr.bf16.mxu0 (!%p1169_p0), %v1288_v34  ;;  %v1306_v34 = vpack.c.bf16 (!%p1169_p0), %v699_v20, %v698_v16  ;;  %v1364_v20 = vpack.c.bf16 (!%p1169_p0), %v777_v18, %v776_v17 }
 0x141   : > { %v423_v43 = vpop.f32.mrb[7].mxu0  ;;  %v494_v44 = vpop.f32.mrb[7].mxu1  ;;  %v738_v37 = vld [vmem:[#allocation6 + $0x1a0] sm:$0xff] (!%p1169_p0)  ;;  %v739_v38 = vld [vmem:[#allocation6 + $0x1a8] sm:$0xff] (!%p1169_p0)  ;;  %v1290_v41 = vpack.c.bf16 (!%p1169_p0), %v691_v36, %v690_v35  ;;  %v1338_v35 = vpack.c.bf16 (!%p1169_p0), %v731_v25, %v730_v21  ;;  %v700_v36 = vld [vmem:[#allocation6 + $0x70] sm:$0xff] (!%p1169_p0) }
 0x142   : > { %v613_v45 = vrot.slane %v592_v39, %v1777_v23  ;;  %v639_v62 = vrot.slane %v630_v40, %v1777_v23  ;;  %v722_v39 = vld [vmem:[#allocation6 + $0x120] sm:$0xff] (!%p1169_p0)  ;;  %v723_v40 = vld [vmem:[#allocation6 + $0x128] sm:$0xff] (!%p1169_p0)  ;;  %v1320_v42 = vpack.c.bf16 (!%p1169_p0), %v739_v38, %v738_v37  ;;  %v708_v43 = vld [vmem:[#allocation6 + $0xb0] sm:$0xff] (!%p1169_p0)  ;;  %v1308_v37 = vpack.c.bf16 (!%p1169_p0), %v717_v29, %v716_v28 }
 0x143   : > { %v709_v44 = vld [vmem:[#allocation6 + $0xb8] sm:$0xff] (!%p1169_p0)  ;;  %1291 = vmatpush3.bf16.msra.mxu0 (!%p1169_p0), %v1290_v41  ;;  %v759_v16 = vld [vmem:[#allocation6 + $0x248] sm:$0xff] (!%p1169_p0)  ;;  %v760_v21 = vld [vmem:[#allocation6 + $0x250] sm:$0xff] (!%p1169_p0) }
 0x144   : > { %v628_v47 = vrot.slane %v613_v45, %v1777_v23  ;;  %v692_v45 = vld [vmem:[#allocation6 + $0x30] sm:$0xff] (!%p1169_p0)  ;;  %1321 = vmatprep.subr.bf16.mxu1 (!%p1169_p0), %v1320_v42  ;;  %v701_v38 = vld [vmem:[#allocation6 + $0x78] sm:$0xff] (!%p1169_p0)  ;;  %v779_v25 = vld [vmem:[#allocation6 + $0x2e8] sm:$0xff] (!%p1169_p0) }
 0x145   : > { %v733_v41 = vld [vmem:[#allocation6 + $0x178] sm:$0xff] (!%p1169_p0)  ;;  %v762_v28 = vld [vmem:[#allocation6 + $0x260] sm:$0xff] (!%p1169_p0)  ;;  %v763_v29 = vld [vmem:[#allocation6 + $0x268] sm:$0xff] (!%p1169_p0) }
 0x146   : > { %v629_v49 = vcombine.low %v621_v46, %v628_v47  ;;  %v530_v50 = vpop.f32.mrb[8].mxu0  ;;  %v571_v51 = vpop.f32.mrb[8].mxu1  ;;  %v1322_v46 = vpack.c.bf16 (!%p1169_p0), %v723_v40, %v722_v39  ;;  %v1292_v47 = vpack.c.bf16 (!%p1169_p0), %v709_v44, %v708_v43  ;;  %v732_v40 = vld [vmem:[#allocation6 + $0x170] sm:$0xff] (!%p1169_p0)  ;;  %v1340_v43 = vpack.c.bf16 (!%p1169_p0), %v749_v32, %v748_v31  ;;  %v766_v44 = vld [vmem:[#allocation6 + $0x280] sm:$0xff] (!%p1169_p0)  ;;  %v781_v31 = vld [vmem:[#allocation6 + $0x2f8] sm:$0xff] (!%p1169_p0) }
 0x147   : > { %v532_v53 = vpop.f32.mrb[9].mxu0  ;;  %v573_v54 = vpop.f32.mrb[9].mxu1  ;;  %v1370_v32 = vpack.c.bf16 (!%p1169_p0), %v763_v29, %v762_v28 }
 0x148   : > { %v672_v55 = vadd.f32 %v629_v49, %v266_v48  ;;  %v631_v56 = vcombine.low %v530_v50, %v532_v53  ;;  %v632_v57 = vcombine.low %v571_v51, %v573_v54  ;;  %v534_v58 = vpop.f32.mrb[10].mxu0  ;;  %v575_v59 = vpop.f32.mrb[10].mxu1  ;;  %v693_v48 = vld [vmem:[#allocation6 + $0x38] sm:$0xff] (!%p1169_p0)  ;;  %v740_v49 = vld [vmem:[#allocation6 + $0x1b0] sm:$0xff] (!%p1169_p0)  ;;  %v710_v54 = vld [vmem:[#allocation6 + $0xc0] sm:$0xff] (!%p1169_p0)  ;;  %1323 = vmatpush3.bf16.msra.mxu1 (!%p1169_p0), %v1322_v46  ;;  %1293 = vmatprep.subr.bf16.mxu0 (!%p1169_p0), %v1292_v47 }
 0x149   : > { %v535_v60 = vpop.f32.mrb[11].mxu0  ;;  %v576_v61 = vpop.f32.mrb[11].mxu1  ;;  %v741_v50 = vld [vmem:[#allocation6 + $0x1b8] sm:$0xff] (!%p1169_p0)  ;;  %v743_v58 = vld [vmem:[#allocation6 + $0x1c8] sm:$0xff] (!%p1169_p0)  ;;  %v1310_v47 = vpack.c.bf16 (!%p1169_p0), %v701_v38, %v700_v36 }
 0x14a   : > { %678 = vst.msk [vmem:[#allocation2] sm:$0x3f] %vm1784_vm2, %v672_v55  ;;  %v646_v63 = vrot.slane %v631_v56, %v1777_v23  ;;  %v653_v0 = vrot.slane %v632_v57, %v1777_v23  ;;  %v1324_v51 = vpack.c.bf16 (!%p1169_p0), %v741_v50, %v740_v49  ;;  %v725_v53 = vld [vmem:[#allocation6 + $0x138] sm:$0xff] (!%p1169_p0)  ;;  %v711_v55 = vld [vmem:[#allocation6 + $0xc8] sm:$0xff] (!%p1169_p0)  ;;  %v1294_v56 = vpack.c.bf16 (!%p1169_p0), %v693_v48, %v692_v45  ;;  %v742_v57 = vld [vmem:[#allocation6 + $0x1c0] sm:$0xff] (!%p1169_p0) }
 0x14b   : > { %v1326_v59 = vpack.c.bf16 (!%p1169_p0), %v725_v53, %v724_v52  ;;  %v1296_v60 = vpack.c.bf16 (!%p1169_p0), %v711_v55, %v710_v54  ;;  %v694_v61 = vld [vmem:[#allocation6 + $0x40] sm:$0xff] (!%p1169_p0)  ;;  %v767_v45 = vld [vmem:[#allocation6 + $0x288] sm:$0xff] (!%p1169_p0)  ;;  %v1342_v48 = vpack.c.bf16 (!%p1169_p0), %v733_v41, %v732_v40  ;;  %v768_v55 = vld [vmem:[#allocation6 + $0x290] sm:$0xff] (!%p1169_p0) }
 0x14c   : > { %v654_v1 = vcombine.low %v639_v62, %v646_v63  ;;  %v668_v2 = vrot.slane %v653_v0, %v1777_v23  ;;  %v695_v62 = vld [vmem:[#allocation6 + $0x48] sm:$0xff] (!%p1169_p0)  ;;  %v726_v63 = vld [vmem:[#allocation6 + $0x140] sm:$0xff] (!%p1169_p0)  ;;  %1325 = vmatprep.subr.bf16.mxu1 (!%p1169_p0), %v1324_v51  ;;  %v1328_v0 = vpack.c.bf16 (!%p1169_p0), %v743_v58, %v742_v57  ;;  %1295 = vmatpush3.bf16.msra.mxu0 (!%p1169_p0), %v1294_v56  ;;  %v769_v56 = vld [vmem:[#allocation6 + $0x298] sm:$0xff] (!%p1169_p0) }
 0x14d   : > { %1327 = vmatpush3.bf16.msra.mxu1 (!%p1169_p0), %v1326_v59  ;;  %1297 = vmatprep.subr.bf16.mxu0 (!%p1169_p0), %v1296_v60  ;;  %v1344_v50 = vpack.c.bf16 (!%p1169_p0), %v767_v45, %v766_v44  ;;  %v750_v52 = vld [vmem:[#allocation6 + $0x200] sm:$0xff] (!%p1169_p0)  ;;  %v751_v53 = vld [vmem:[#allocation6 + $0x208] sm:$0xff] (!%p1169_p0)  ;;  %v1348_v59 = vpack.c.bf16 (!%p1169_p0), %v769_v56, %v768_v55  ;;  %v752_v60 = vld [vmem:[#allocation6 + $0x210] sm:$0xff] (!%p1169_p0) }
 0x14e   : > { %v661_v3 = vrot.slane %v654_v1, %v1777_v23  ;;  %683 = sbr.rel (%p1169_p0) target bundleno = 607 (0x25f), region = 48  ;;  %v727_v1 = vld [vmem:[#allocation6 + $0x148] sm:$0xff] (!%p1169_p0)  ;;  %1329 = vmatprep.subr.bf16.mxu1 (!%p1169_p0), %v1328_v0  ;;  %v1346_v57 = vpack.c.bf16 (!%p1169_p0), %v751_v53, %v750_v52 }
 0x14f   : > { %v1330_v7 = vpack.c.bf16 (!%p1169_p0), %v727_v1, %v726_v63  ;;  %v770_v63 = vld [vmem:[#allocation6 + $0x2a0] sm:$0xff] (!%p1169_p0)  ;;  %v771_v0 = vld [vmem:[#allocation6 + $0x2a8] sm:$0xff] (!%p1169_p0) }
 0x150   : > { %v669_v5 = vcombine.low %v661_v3, %v668_v2  ;;  %v712_v2 = vld [vmem:[#allocation6 + $0xd0] sm:$0xff] (!%p1169_p0)  ;;  %v713_v3 = vld [vmem:[#allocation6 + $0xd8] sm:$0xff] (!%p1169_p0) }
 0x151   : > { %v1300_v8 = vpack.c.bf16 (!%p1169_p0), %v713_v3, %v712_v2  ;;  %1331 = vmatpush3.bf16.msra.mxu1 (!%p1169_p0), %v1330_v7  ;;  %v1352_v2 = vpack.c.bf16 (!%p1169_p0), %v771_v0, %v770_v63  ;;  %v754_v3 = vld [vmem:[#allocation6 + $0x220] sm:$0xff] (!%p1169_p0) }
 0x152   : > { %v673_v6 = vadd.f32 %v669_v5, %v267_v4  ;;  %v744_v4 = vld [vmem:[#allocation6 + $0x1d0] sm:$0xff] (!%p1169_p0)  ;;  %v745_v5 = vld [vmem:[#allocation6 + $0x1d8] sm:$0xff] (!%p1169_p0) }
 0x153   : > { %v1332_v12 = vpack.c.bf16 (!%p1169_p0), %v745_v5, %v744_v4  ;;  %v755_v4 = vld [vmem:[#allocation6 + $0x228] sm:$0xff] (!%p1169_p0)  ;;  %v772_v5 = vld [vmem:[#allocation6 + $0x2b0] sm:$0xff] (!%p1169_p0) }
 0x154   : > { %679 = vst.msk [vmem:[#allocation2 + $0x6] sm:$0x3f] %vm1784_vm2, %v673_v6  ;;  %v1298_v6 = vpack.c.bf16 (!%p1169_p0), %v695_v62, %v694_v61  ;;  %v753_v61 = vld [vmem:[#allocation6 + $0x218] sm:$0xff] (!%p1169_p0)  ;;  %v1354_v7 = vpack.c.bf16 (!%p1169_p0), %v755_v4, %v754_v3 }
 0x155   : > { %1333 = vmatprep.subr.bf16.mxu1 %v1332_v12  ;;  %v1350_v1 = vpack.c.bf16 %v753_v61, %v752_v60  ;;  %v775_v12 = vld [vmem:[#allocation6 + $0x2c8] sm:$0xff] }
 0x156   : > { %1299 = vmatpush3.bf16.msra.mxu0 %v1298_v6  ;;  %1335 = vmatpush3.bf16.msra.mxu1 %v1334_v22  ;;  %v773_v6 = vld [vmem:[#allocation6 + $0x2b8] sm:$0xff]  ;;  %v1360_v14 = vpack.c.bf16 %v775_v12, %v774_v11 }
 0x157   : > { %1301 = vmatprep.subr.bf16.mxu0 %v1300_v8  ;;  %1337 = vmatprep.subr.bf16.mxu1 %v1336_v27  ;;  %v1356_v8 = vpack.c.bf16 %v773_v6, %v772_v5  ;;  %v761_v22 = vld [vmem:[#allocation6 + $0x258] sm:$0xff] }
 0x15a   : > { %1303 = vmatpush3.bf16.msra.mxu0 %v1302_v19  ;;  %1339 = vmatpush3.bf16.msra.mxu1 %v1338_v35  ;;  %v1362_v19 = vpack.c.bf16 %v759_v16, %v758_v15  ;;  %v765_v35 = vld [vmem:[#allocation6 + $0x278] sm:$0xff] }
 0x15b   : > { %v1484_v26 = vld [vmem:[#allocation2] ss:$6 sps:$4 sm:$0xff]   ;;  %v1486_v30 = vld [vmem:[#allocation2 + $0x4] ss:$6 sps:$4 sm:$0x33]   ;;  %1305 = vmatprep.subr.bf16.mxu0 %v1304_v24  ;;  %1341 = vmatprep.subr.bf16.mxu1 %v1340_v43  ;;  %v778_v24 = vld [vmem:[#allocation6 + $0x2e0] sm:$0xff] }
 0x15c   : > { %v799_v33 = vrot.slane %v1484_v26, %v1777_v23  ;;  %v1800_v42 = vrot.slane %v1486_v30, %v1777_v23  ;;  %v1366_v26 = vpack.c.bf16 %v761_v22, %v760_v21  ;;  %v1368_v27 = vpack.c.bf16 %v779_v25, %v778_v24  ;;  %v780_v30 = vld [vmem:[#allocation6 + $0x2f0] sm:$0xff] }
 0x15e   : > { %v807_v39 = vcombine.high %v799_v33, %v799_v33  ;;  %1307 = vmatpush3.bf16.msra.mxu0 %v1306_v34  ;;  %v815_v49 = vrot.slane %v799_v33, %v1777_v23  ;;  %v808_v54 = vcombine.high %v1800_v42, %v1800_v42  ;;  %1343 = vmatpush3.bf16.msra.mxu1 %v1342_v48  ;;  %v764_v34 = vld [vmem:[#allocation6 + $0x270] sm:$0xff] }
 0x15f   : > { %1309 = vmatprep.subr.bf16.mxu0 %v1308_v37  ;;  %v1372_v33 = vpack.c.bf16 %v781_v31, %v780_v30  ;;  %v1374_v36 = vpack.c.bf16 %v765_v35, %v764_v34  ;;  %v822_v37 = vrot.slane %v1800_v42, %v1777_v23 }
 0x160   : > { %v829_v46 = vrot.slane %v807_v39, %v1777_v23  ;;  %v837_v58 = vcombine.high %v815_v49, %v815_v49  ;;  %v836_v62 = vrot.slane %v808_v54, %v1777_v23  ;;  %v1170_v39 = vld [vmem:[%s1860_s2] ss:$0 sm:$0xff] }
 0x162   : > { %v838_v51 = vcombine.high %v829_v46, %v829_v46  ;;  %909 = vmatprep.mubr.f32.mxu0 %v829_v46  ;;  %1311 = vmatpush3.bf16.msra.mxu0 %v1310_v47 }
 0x163   : > { %1345 = vmatprep.subr.bf16.mxu0 %v1344_v50 }
 0x164   : > { %979 = vmatprep.mubr.f32.mxu1 %v838_v51 }
 0x165   : > { %910 = vmatmul.mubr.f32.vlgmr.msra.gmra.mrb[0].mxu0 %v815_v49  ;;  %980 = vmatmul.mubr.f32.vlgmr.msra.gmra.mrb[0].mxu1 %v837_v58 }
 0x166   : > { %1347 = vmatpush3.bf16.msra.mxu0 %v1346_v57  ;;  %1049 = vmatprep.mubr.f32.mxu0 %v836_v62 }
 0x167   : > { %1349 = vmatprep.subr.bf16.mxu0 %v1348_v59 }
 0x16a   : > { %1351 = vmatpush3.bf16.msra.mxu0 %v1350_v1 }
 0x16b   : > { %1353 = vmatprep.subr.bf16.mxu0 %v1352_v2 }
 0x16e   : > { %1355 = vmatpush3.bf16.msra.mxu0 %v1354_v7 }
 0x16f   : > { %1357 = vmatprep.subr.bf16.mxu0 %v1356_v8 }
 0x172   : > { %1359 = vmatpush3.bf16.msra.mxu0 %v1358_v13 }
 0x173   : > { %1361 = vmatprep.subr.bf16.mxu0 %v1360_v14 }
 0x176   : > { %1363 = vmatpush3.bf16.msra.mxu0 %v1362_v19 }
 0x177   : > { %1365 = vmatprep.subr.bf16.mxu0 %v1364_v20 }
 0x17a   : > { %1367 = vmatpush3.bf16.msra.mxu0 %v1366_v26 }
 0x17b   : > { %1369 = vmatprep.subr.bf16.mxu0 %v1368_v27 }
 0x17e   : > { %1371 = vmatpush3.bf16.msra.mxu0 %v1370_v32 }
 0x17f   : > { %1373 = vmatprep.subr.bf16.mxu0 %v1372_v33 }
 0x182   : > { %1375 = vmatpush3.bf16.msra.mxu0 %v1374_v36 }
 0x185   : > { %1050 = vmatmul.mubr.f32.vlgmr.msra.gmra.mrb[2].mxu0 %v822_v37 }
 0x238   : > { %v1207_v38 = vpop.f32.mrb[0].mxu0  ;;  %v1242_v41 = vpop.f32.mrb[0].mxu1 }
 0x239   : > { %v1208_v40 = vpop.f32.mrb[1].mxu0  ;;  %v1243_v44 = vpop.f32.mrb[1].mxu1 }
 0x23a   : > { %v1209_v43 = vadd.f32 %v1208_v40, %v1207_v38  ;;  %v1244_v45 = vadd.f32 %v1243_v44, %v1242_v41 }
 0x23c   : > { %v912_v46 = vadd.f32 %v1209_v43, %v1170_v39 }
 0x23e   : > { %v982_v47 = vadd.f32 %v1244_v45, %v912_v46 }
 0x258   : > { %v1277_v48 = vpop.f32.mrb[2].mxu0 }
 0x259   : > { %v1278_v49 = vpop.f32.mrb[3].mxu0 }
 0x25a   : > { %v1279_v50 = vadd.f32 %v1278_v49, %v1277_v48 }
 0x25c   : > { %v1052_v51 = vadd.f32 %v1279_v50, %v982_v47 }
 0x25e   : > { %1055 = vst [vmem:[#allocation8] sm:$0x3] %v1052_v51 }
 0x25f PF: > { %p1814_p1 = scmp.eq.s32.totalorder %s1139_s18, 1  ;;  %s1614_s24 = smov [#allocation8]  }
 0x260   : > { %s1065_s26 = sshll.u32 %s1614_s24, 4  ;;  %s1066_s26 = int_to_ptr.vmem [resolvable:$true] %s1065_s26 }
 0x261   : > { %s1515_s27 = scalar_lea.vmem %s1066_s26, 32  ;;  %p1522_p7 = scmp.lt.s32.totalorder %s1066_s26, %s1066_s26 }
 0x262   : > { %p1516_p2 = scmp.ne.s32.totalorder %s1066_s26, %s1515_s27  ;;  %p1523_p9 = scmp.lt.s32.totalorder %s1515_s27, %s1515_s27 }
 0x264   : > { %p1517_p4 = pnand %p1516_p2, %p1814_p1  ;;  %p1524_p11 = por %p1523_p9, %p1522_p7 }
 0x266   : > { %p1518_p6 = pneg %p1517_p4 }
 0x268   : > { %p1525_p13 = pnand %p1524_p11, %p1518_p6 }
 0x26a   : > { %1528 = shalt.err (!%p1525_p13)
}
 0x26b   : > { %s1529_s18 = scalar_lea.hbm %s1861_s3, 32 }
 0x26c   : > { %p1530_p3 = scmp.ne.s32.totalorder %s1861_s3, %s1529_s18  ;;  %p1535_p10 = scmp.lt.u32.totalorder %s1529_s18, %s1861_s3 }
 0x26e   : > { %p1531_p5 = pnand %p1530_p3, %p1814_p1 }
 0x270   : > { %p1532_p8 = pneg %p1531_p5 }
 0x272   : > { %p1537_p12 = pnand %p1535_p10, %p1532_p8 }
 0x274   : > { %1540 = shalt.err (!%p1537_p12)
}
 0x275   : > { %1393 = dma.vmem_to_hbm [thread:$0]  (%p1814_p1), %s1066_s26, 32, %s1861_s3, [#allocation5]  }
 0x276   : > { %1574 = dma.done.wait (%p1814_p1), [#allocation5], 32  }
 0x277   : > { %1576 = vsyncadd (%p1814_p1), [#allocation5], 4294967264 }
 0x278 PF: > { %s18_s17 = sadd.s32 1, %s1599_s17   ;;  %s1879_s12 = smov %s1583_s13 }
 0x279   : > { %p15_p0 = scmp.ge.s32.totalorder %s18_s17, 4   ;;  %s1880_s13 = smov %s1587_s14 }
 0x27a   : > { %s1881_s14 = smov %s1693_s25  ;;  %s1882_s15 = smov %s1595_s16 }
 0x27b   : > { %s1883_s16 = smov %s1885_s19  ;;  %17 = sbr.rel (!%p15_p0) target bundleno = 6 (0x6), region = 87 }
 0x282   :  { %1078 = vsyncpa [#allocation4], 1 }
 0x283   :  { %1080 = vsyncpa [#allocation4 + $0x1], 1 }
 0x284   :  { %1081 = vsyncpa [#allocation7], 1 }
 0x285   :  { %1082 = vsyncpa [#allocation5], 1 }
 0x286   :  { %1084 = vsyncpa [#allocation5 + $0x1], 1 }

</bundles_post_ra>
